<compile_context>
chip_gen: v6e
topology: v6e:2x2x1
jax: 0.10.0
libtpu: 0.0.40
codegen_flags: <defaults>
</compile_context>

<pallas_src>
import functools

import numpy as np
import jax
import jax.numpy as jnp
from jax.experimental import pallas as pl
from jax.experimental.pallas import tpu as pltpu


def _round_up(x, m):
    return ((x + m - 1) // m) * m


def fm_fused_kernel(bias_ref, idx_ref, p_ref, w_ref, out_ref, *, embed_dim):
    """Fused FM forward (gather + reductions + sigmoid) for one batch tile.

    bias_ref: (1,)        f32 SMEM -- global bias (scalar)
    idx_ref:  (F,  TB)    i32 VMEM -- global feature ids, batch on lanes
    p_ref:    (Vp, F)     f32 VMEM -- static one-hot "vocab row -> field" selector
    w_ref:    (Wr, Vp)    f32 VMEM -- fused weights [emb2^T ; ||emb2||^2 ; emb1^T ; 0]
    out_ref:  (1,  TB)    f32 VMEM -- sigmoid(logit), lane-dense store
    """
    D = embed_dim

    # Replicate each field's id onto its own vocab rows with a tiny MXU matmul
    # (P has exactly one 1.0 per valid vocab row):  sel[v, b] = idx[field(v), b]
    idx_f = idx_ref[...].astype(jnp.float32)                                # (F, TB)
    sel = jnp.dot(p_ref[...], idx_f, preferred_element_type=jnp.float32)    # (Vp, TB)

    # Exact multi-hot counts: counts[v, b] = 1.0 iff row v's field selected id v.
    # (+0.5 then truncate == round; guards against any tiny matmul rounding.)
    sel_int = (sel + 0.5).astype(jnp.int32)
    vocab_iota = jax.lax.broadcasted_iota(jnp.int32, sel.shape, 0)
    counts = (vocab_iota == sel_int).astype(jnp.float32)                    # (Vp, TB)

    # One MXU contraction performs all three gathers + field reductions:
    #   rows 0..D-1 : field_sum[d, b] = sum_f emb2[id_fb, d]
    #   row  D      : sum_square[b]   = sum_{f,d} emb2[id_fb, d]^2
    #   row  D+1    : linear[b]       = sum_f emb1[id_fb, 0]
    res = jnp.dot(w_ref[...], counts, preferred_element_type=jnp.float32)   # (Wr, TB)

    field_sum = res[0:D, :]                                                 # (D, TB)
    sum_square = res[D:D + 1, :]                                            # (1, TB)
    linear = res[D + 1:D + 2, :]                                            # (1, TB)
    square_sum = jnp.sum(field_sum * field_sum, axis=0, keepdims=True)      # (1, TB)

    logit = linear + bias_ref[0] + 0.5 * (square_sum - sum_square)
    out_ref[...] = jax.nn.sigmoid(logit)                                    # (1, TB)


def fm_forward(x, table1, table2, field_dims, bias, *, tile_b=4096):
    """FM forward.  x: (B, F) int32 per-field (local) indices."""
    B, F = x.shape
    vocab, D = table2.shape

    field_dims = np.asarray(field_dims, dtype=np.int64)
    assert field_dims.shape[0] == F and int(field_dims.sum()) == vocab

    # ---- static gather metadata (depends only on field_dims / params) ------
    offsets = np.concatenate([[0], np.cumsum(field_dims)[:-1]]).astype(np.int32)
    v_pad = _round_up(vocab, 128)          # whole (padded) vocab stays VMEM-resident
    field_of = np.repeat(np.arange(F, dtype=np.int64), field_dims)          # (vocab,)
    p_np = np.zeros((v_pad, F), dtype=np.float32)
    p_np[np.arange(vocab), field_of] = 1.0                                  # pad rows = 0
    p_mat = jnp.asarray(p_np)

    # Fused weight: [table2^T ; row-wise ||table2||^2 ; table1^T ; zero pad].
    t2 = table2.astype(jnp.float32)
    w_rows = _round_up(D + 2, 8)
    w_core = jnp.concatenate(
        [t2, jnp.sum(t2 * t2, axis=-1, keepdims=True),
         table1.astype(jnp.float32)], axis=-1)                              # (vocab, D+2)
    w = jnp.zeros((w_rows, v_pad), jnp.float32).at[:D + 2, :vocab].set(w_core.T)

    # ---- lane-dense indices: batch on the 128-lane axis ---------------------
    idx_t = (x.astype(jnp.int32) + jnp.asarray(offsets)[None, :]).T         # (F, B)

    # Batch tiling: big tiles for DMA efficiency, but keep >=4 grid steps on
    # large batches so v7x's 2 TensorCores both get work on the parallel axis.
    lane = 128
    b128 = _round_up(B, lane)
    cap = max(lane, (b128 // 4) // lane * lane) if b128 >= 4 * lane else b128
    tb = max(lane, min(tile_b, cap))
    bp = _round_up(B, tb)
    if bp != B:
        # Only the tiny (F, B) int32 index slab gets padded (4*F bytes/row);
        # the old full-activation pad + transpose is gone entirely.
        idx_t = jnp.pad(idx_t, ((0, 0), (0, bp - B)))

    bias_s = jnp.reshape(bias, (1,)).astype(jnp.float32)                    # (1,) scalar

    kernel = functools.partial(fm_fused_kernel, embed_dim=D)
    out = pl.pallas_call(
        kernel,
        out_shape=jax.ShapeDtypeStruct((1, bp), jnp.float32),
        grid_spec=pltpu.PrefetchScalarGridSpec(
            num_scalar_prefetch=0,
            grid=(bp // tb,),
            in_specs=[
                # scalar bias lives untiled in SMEM
                pl.BlockSpec(memory_space=pltpu.MemorySpace.SMEM),
                # streaming per-tile indices (the only per-row HBM traffic)
                pl.BlockSpec((F, tb), lambda i: (0, i)),
                # VMEM-resident constants: block index never changes -> no re-DMA
                pl.BlockSpec((v_pad, F), lambda i: (0, 0)),
                pl.BlockSpec((w_rows, v_pad), lambda i: (0, 0)),
            ],
            out_specs=pl.BlockSpec((1, tb), lambda i: (0, i)),
        ),
        compiler_params=pltpu.CompilerParams(
            dimension_semantics=("parallel",),
            vmem_limit_bytes=32 * 1024 * 1024),
    )(bias_s, idx_t, p_mat, w)

    return out[0, :B].reshape(B, 1)


def fm_reference(x, table1, table2, field_dims, bias):
    """Pure-JAX reference matching the PyTorch forward exactly."""
    offsets = np.concatenate([[0], np.cumsum(field_dims)[:-1]]).astype(np.int32)
    idx = x + jnp.asarray(offsets)[None, :]
    e1 = jnp.take(table1, idx, axis=0)[..., 0]                              # (B, F)
    e2 = jnp.take(table2, idx, axis=0)                                      # (B, F, D)
    square_sum = jnp.sum(jnp.sum(e2, axis=1) ** 2, axis=1)
    sum_square = jnp.sum(jnp.sum(e2 ** 2, axis=1), axis=1)
    logit = jnp.sum(e1, axis=1) + bias[0] + (square_sum - sum_square) / 2.0
    return jax.nn.sigmoid(logit)[:, None]


if __name__ == "__main__":
    key = jax.random.PRNGKey(0)

    # Module config (small, consistent with FM.__init__):
    field_dims = [10, 20, 30, 40, 5, 6, 7, 8]                               # 8 fields
    embed_dim = 4
    num_fields = len(field_dims)
    vocab = int(np.sum(field_dims))

    B = 16  # batch

    k1, k2, k3 = jax.random.split(key, 3)
    # Deterministic parameter init (embedding tables + scalar bias).
    table1 = 0.1 * jax.random.normal(k1, (vocab, 1), dtype=jnp.float32)
    table2 = 0.1 * jax.random.normal(k2, (vocab, embed_dim), dtype=jnp.float32)
    bias = jnp.zeros((1,), dtype=jnp.float32)

    # Deterministic integer inputs: one in-range index per field.
    maxvals = jnp.asarray(field_dims, dtype=jnp.int32)
    u = jax.random.uniform(k3, (B, num_fields))
    x = (u * maxvals[None, :].astype(jnp.float32)).astype(jnp.int32)
    x = jnp.clip(x, 0, maxvals[None, :] - 1)

    out = fm_forward(x, table1, table2, field_dims, bias)
    out = jax.block_until_ready(out)

    ref = fm_reference(x, table1, table2, field_dims, bias)
    # Tolerance allows for MXU accumulation-order / multi-pass f32 differences;
    # any real gather/reduction bug shows up as >=1e-2 deviations.
    np.testing.assert_allclose(np.asarray(out), np.asarray(ref),
                               rtol=2e-3, atol=2e-3)
    assert out.shape == (B, 1)

    print("KERNEL_OK")
</pallas_src>

<mosaic_0001>
module attributes {stable_mosaic.version = 11 : i64} {
  func.func @fm_fused_kernel(%arg0: i32, %arg1: memref<1xf32, #tpu.memory_space<smem>>, %arg2: memref<8x128xi32, #tpu.memory_space<vmem>>, %arg3: memref<128x8xf32, #tpu.memory_space<vmem>>, %arg4: memref<8x128xf32, #tpu.memory_space<vmem>>, %arg5: memref<1x128xf32, #tpu.memory_space<vmem>>) attributes {dimension_semantics = [#tpu.dimension_semantics<parallel>], iteration_bounds = array<i64: 1>, scalar_prefetch = 0 : i64, scratch_operands = 0 : i64, tpu.core_type = #tpu.core_type<tc>, window_params = [{transform_indices = @transform_0, window_bounds = array<i64: 1>}, {transform_indices = @transform_1, window_bounds = array<i64: 8, 128>}, {pipeline_mode = #tpu.pipeline_mode<synchronous>, transform_indices = @transform_2, window_bounds = array<i64: 128, 8>}, {pipeline_mode = #tpu.pipeline_mode<synchronous>, transform_indices = @transform_3, window_bounds = array<i64: 8, 128>}, {transform_indices = @transform_4, window_bounds = array<i64: 1, 128>}]} {
    %c0 = arith.constant 0 : index
    %c0_0 = arith.constant 0 : index
    %0 = vector.load %arg2[%c0, %c0_0] : memref<8x128xi32, #tpu.memory_space<vmem>>, vector<8x128xi32>
    %1 = arith.sitofp %0 : vector<8x128xi32> to vector<8x128xf32>
    %c0_1 = arith.constant 0 : index
    %c0_2 = arith.constant 0 : index
    %2 = vector.load %arg3[%c0_1, %c0_2] : memref<128x8xf32, #tpu.memory_space<vmem>>, vector<128x8xf32>
    %cst = arith.constant dense<0.000000e+00> : vector<128x128xf32>
    %3 = tpu.matmul %2, %1, %cst {dimension_numbers = #tpu.dot_dimension_numbers<[1], [0], [0], [1], [0, 0, 1, 1], [], []>} : vector<128x8xf32>, vector<8x128xf32>, vector<128x128xf32> -> vector<128x128xf32>
    %cst_3 = arith.constant 5.000000e-01 : f32
    %4 = vector.broadcast %cst_3 : f32 to vector<128x128xf32>
    %5 = arith.addf %3, %4 : vector<128x128xf32>
    %6 = arith.fptosi %5 : vector<128x128xf32> to vector<128x128xi32>
    %7 = tpu.iota {dimensions = array<i32: 0>} : vector<128x128xi32>
    %8 = arith.cmpi eq, %7, %6 : vector<128x128xi32>
    %9 = arith.extui %8 : vector<128x128xi1> to vector<128x128xi32>
    %10 = arith.sitofp %9 : vector<128x128xi32> to vector<128x128xf32>
    %c0_4 = arith.constant 0 : index
    %c0_5 = arith.constant 0 : index
    %11 = vector.load %arg4[%c0_4, %c0_5] : memref<8x128xf32, #tpu.memory_space<vmem>>, vector<8x128xf32>
    %cst_6 = arith.constant dense<0.000000e+00> : vector<8x128xf32>
    %12 = tpu.matmul %11, %10, %cst_6 {dimension_numbers = #tpu.dot_dimension_numbers<[1], [0], [0], [1], [0, 0, 1, 1], [], []>} : vector<8x128xf32>, vector<128x128xf32>, vector<8x128xf32> -> vector<8x128xf32>
    %13 = vector.extract_strided_slice %12 {offsets = [0, 0], sizes = [4, 128], strides = [1, 1]} : vector<8x128xf32> to vector<4x128xf32>
    %14 = vector.extract_strided_slice %12 {offsets = [4, 0], sizes = [1, 128], strides = [1, 1]} : vector<8x128xf32> to vector<1x128xf32>
    %15 = vector.extract_strided_slice %12 {offsets = [5, 0], sizes = [1, 128], strides = [1, 1]} : vector<8x128xf32> to vector<1x128xf32>
    %16 = arith.mulf %13, %13 : vector<4x128xf32>
    %cst_7 = arith.constant dense<0.000000e+00> : vector<128xf32>
    %17 = vector.multi_reduction <add>, %16, %cst_7 [0] : vector<4x128xf32> to vector<128xf32>
    %18 = vector.shape_cast %17 : vector<128xf32> to vector<1x128xf32>
    %c0_8 = arith.constant 0 : index
    %19 = memref.load %arg1[%c0_8] : memref<1xf32, #tpu.memory_space<smem>>
    %20 = vector.broadcast %19 : f32 to vector<1x128xf32>
    %21 = arith.addf %15, %20 : vector<1x128xf32>
    %22 = arith.subf %18, %14 : vector<1x128xf32>
    %cst_9 = arith.constant 5.000000e-01 : f32
    %23 = vector.broadcast %cst_9 : f32 to vector<1x128xf32>
    %24 = arith.mulf %23, %22 : vector<1x128xf32>
    %25 = arith.addf %21, %24 : vector<1x128xf32>
    %26 = arith.negf %25 : vector<1x128xf32>
    %27 = math.exp %26 : vector<1x128xf32>
    %cst_10 = arith.constant 1.000000e+00 : f32
    %28 = vector.broadcast %cst_10 : f32 to vector<1x128xf32>
    %29 = arith.addf %28, %27 : vector<1x128xf32>
    %30 = arith.divf %28, %29 : vector<1x128xf32>
    %c0_11 = arith.constant 0 : index
    %c0_12 = arith.constant 0 : index
    %31 = vector.load %arg5[%c0_11, %c0_12] : memref<1x128xf32, #tpu.memory_space<vmem>>, vector<1x128xf32>
    tpu.vector_store %arg5[%c0_11, %c0_12], %30 {strides = array<i32>} : memref<1x128xf32, #tpu.memory_space<vmem>>, vector<1x128xf32>,
    return
  }
  func.func @transform_0(%arg0: i32) -> i32 {
    %c0_i32 = arith.constant 0 : i32
    %c0_i32_0 = arith.constant 0 : i32
    return %c0_i32 : i32
  }
  func.func @transform_1(%arg0: i32) -> (i32, i32) {
    %c0_i32 = arith.constant 0 : i32
    %c0_i32_0 = arith.constant 0 : i32
    return %c0_i32, %arg0 : i32, i32
  }
  func.func @transform_2(%arg0: i32) -> (i32, i32) {
    %c0_i32 = arith.constant 0 : i32
    %c0_i32_0 = arith.constant 0 : i32
    %c0_i32_1 = arith.constant 0 : i32
    return %c0_i32, %c0_i32_0 : i32, i32
  }
  func.func @transform_3(%arg0: i32) -> (i32, i32) {
    %c0_i32 = arith.constant 0 : i32
    %c0_i32_0 = arith.constant 0 : i32
    %c0_i32_1 = arith.constant 0 : i32
    return %c0_i32, %c0_i32_0 : i32, i32
  }
  func.func @transform_4(%arg0: i32) -> (i32, i32) {
    %c0_i32 = arith.constant 0 : i32
    %c0_i32_0 = arith.constant 0 : i32
    return %c0_i32, %arg0 : i32, i32
  }
}

</mosaic_0001>

<bundles_post_ra>
// kernel: tpu_custom_call.1
= control target key start
LH: loop header
LB: loop body
LE: loop exit
PB: predicated region body
PF: predicated region fallthrough
CT: control target
= control target key end

     0   :  { %vm37_vm0 = vcmask 64512   ;;  %s796_s0 = inlined_call_operand.<no memory space> [shape: f32[1], index: 0, kind: input, shape index: {}]   ;;  %s797_s1 = inlined_call_operand.vmem [shape: s32[8,128], index: 1, kind: input, shape index: {}]   ;;  %s798_s2 = inlined_call_operand.vmem [shape: f32[128,8], index: 2, kind: input, shape index: {}]   ;;  %s799_s3 = inlined_call_operand.vmem [shape: f32[8,128], index: 3, kind: input, shape index: {}]   ;;  %s800_s4 = inlined_call_operand.hbm [shape: f32[1,128], index: 4, kind: output, shape index: {}]  }
   0x1   :  { %v19_v0 = vld [vmem:[%s797_s1] sm:$0xff]  ;;  %v22_v3 = vld [vmem:[%s798_s2 + $0x8] sm:$0xff]  ;;  %v23_v4 = vld [vmem:[%s798_s2 + $0x10] sm:$0xff] }
   0x2   :  { %v21_v1 = vld [vmem:[%s798_s2] sm:$0xff]  ;;  %v20_v2 = vcvt.s32.f32 %v19_v0 }
   0x3   :  { %507 = vmatprep.mubr.msk.f32.mxu0 %vm37_vm0, %v21_v1 }
   0x4   :  { %505 = vmatprep.subr.mxu0 %v20_v2 }
   0x5   :  { %506 = vmatpush3.msra.mxu0 %v20_v2 }
   0x6   :  { %508 = vmatmul.mubr.msk.f32.vlgmr.msra.gmra.mxu0 %vm37_vm0, %v22_v3 }
   0x7   :  { %10 = vsyncpa [#allocation4], 0  ;;  %510 = vmatprep.mubr.msk.f32.mxu0 %vm37_vm0, %v23_v4  ;;  %v24_v5 = vld [vmem:[%s798_s2 + $0x18] sm:$0xff]  ;;  %v25_v6 = vld [vmem:[%s798_s2 + $0x20] sm:$0xff]  ;;  %v628_v18 = vmov 0.0   ;;  %vm629_vm1 = vmmov 0   ;;  %v247_v32 = vlaneseq }
   0x8   :  { %v26_v7 = vld [vmem:[%s798_s2 + $0x28] sm:$0xff]  ;;  %v27_v8 = vld [vmem:[%s798_s2 + $0x30] sm:$0xff]  ;;  %v28_v9 = vld [vmem:[%s798_s2 + $0x38] sm:$0xff]  ;;  %531 = vmatprep.subr.mxu1 %v628_v18  ;;  %563 = vmatprep.mubr.msk.f32.mxu1 %vm629_vm1, %v628_v18  ;;  %v630_v55 = vmov 1.0   ;;  %s631_s23 = smov [#allocation3]  }
   0x9   :  { %v29_v10 = vld [vmem:[%s798_s2 + $0x40] sm:$0xff]  ;;  %v30_v11 = vld [vmem:[%s798_s2 + $0x48] sm:$0xff]  ;;  %v31_v12 = vld [vmem:[%s798_s2 + $0x50] sm:$0xff]  ;;  %v734_v36 = vshrl.u32 %v247_v32, 7  ;;  %s414_s24 = sshll.u32 %s631_s23, 4  ;;  %s415_s24 = int_to_ptr.vmem [resolvable:$true] %s414_s24 }
   0xa   :  { %511 = vmatmul.mubr.msk.f32.gmra.mxu0 %vm37_vm0, %v24_v5  ;;  %v32_v13 = vld [vmem:[%s798_s2 + $0x58] sm:$0xff]  ;;  %v33_v14 = vld [vmem:[%s798_s2 + $0x60] sm:$0xff]  ;;  %v34_v15 = vld [vmem:[%s798_s2 + $0x68] sm:$0xff]  ;;  %s606_s25 = scalar_lea.vmem %s415_s24, 16  ;;  %s610_s26 = scalar_lea.vmem %s415_s24, 32 }
   0xb   :  { %513 = vmatprep.mubr.msk.f32.mxu0 %vm37_vm0, %v25_v6  ;;  %v35_v16 = vld [vmem:[%s798_s2 + $0x70] sm:$0xff]  ;;  %v36_v17 = vld [vmem:[%s798_s2 + $0x78] sm:$0xff]  ;;  %v263_v40 = vadd.s32 120, %v734_v36  ;;  %v262_v45 = vadd.s32 112, %v734_v36  ;;  %v261_v51 = vadd.s32 104, %v734_v36  ;;  %v260_v56 = vadd.s32 96, %v734_v36  ;;  %p607_p0 = scmp.ne.s32.totalorder %s415_s24, %s606_s25  ;;  %p611_p1 = scmp.lt.s32.totalorder %s415_s24, %s415_s24 }
   0xc   :  { %v259_v60 = vadd.s32 88, %v734_v36  ;;  %v258_v0 = vadd.s32 80, %v734_v36  ;;  %v257_v4 = vadd.s32 72, %v734_v36  ;;  %v251_v32 = vadd.s32 24, %v734_v36  ;;  %p612_p2 = scmp.lt.s32.totalorder %s610_s26, %s606_s25 }
   0xe   :  { %514 = vmatmul.mubr.msk.f32.gmra.mxu0 %vm37_vm0, %v26_v7  ;;  %p613_p3 = por %p612_p2, %p611_p1 }
   0xf   :  { %516 = vmatprep.mubr.msk.f32.mxu0 %vm37_vm0, %v27_v8  ;;  %v256_v8 = vadd.s32 64, %v734_v36 }
  0x10   :  { %p614_p4 = pnand %p613_p3, %p607_p0 }
  0x12   :  { %517 = vmatmul.mubr.msk.f32.gmra.mxu0 %vm37_vm0, %v28_v9 }
  0x13   :  { %519 = vmatprep.mubr.msk.f32.mxu0 %vm37_vm0, %v29_v10 }
  0x16   :  { %520 = vmatmul.mubr.msk.f32.gmra.mxu0 %vm37_vm0, %v30_v11 }
  0x17   :  { %522 = vmatprep.mubr.msk.f32.mxu0 %vm37_vm0, %v31_v12  ;;  %v255_v12 = vadd.s32 56, %v734_v36 }
  0x1a   :  { %523 = vmatmul.mubr.msk.f32.gmra.mxu0 %vm37_vm0, %v32_v13 }
  0x1b   :  { %525 = vmatprep.mubr.msk.f32.mxu0 %vm37_vm0, %v33_v14 }
  0x1e   :  { %526 = vmatmul.mubr.msk.f32.gmra.mxu0 %vm37_vm0, %v34_v15 }
  0x1f   :  { %528 = vmatprep.mubr.msk.f32.mxu0 %vm37_vm0, %v35_v16  ;;  %v254_v16 = vadd.s32 48, %v734_v36 }
  0x22   :  { %529 = vmatmul.mubr.msk.f32.gmra.mxu0 %vm37_vm0, %v36_v17 }
  0xc6   :  { %v726_v19 = vpop.f32.mrf.mxu0 }
  0xc8   :  { %v728_v20 = vpop.f32.mrf.mxu0 }
  0xca   :  { %v730_v21 = vpop.f32.mrf.mxu0 }
  0xcb   :  { %v168_v13 = vadd.f32 0.5, %v730_v21  ;;  %v253_v21 = vadd.s32 40, %v734_v36 }
  0xcc   :  { %v732_v22 = vpop.f32.mrf.mxu0 }
  0xcd   :  { %v163_v17 = vadd.f32 0.5, %v732_v22  ;;  %v252_v22 = vadd.s32 32, %v734_v36 }
  0xce   :  { %v515_v23 = vpop.f32.mrf.mxu0 }
  0xcf   :  { %v178_v5 = vadd.f32 0.5, %v515_v23 }
  0xd0   :  { %v172_v24 = vpop.f32.mrf.mxu0 }
  0xd1   :  { %v173_v9 = vadd.f32 0.5, %v172_v24  ;;  %v576_v14 = vtrunc.f32 %v178_v5 }
  0xd2   :  { %v518_v25 = vpop.f32.mrf.mxu0 }
  0xd3   :  { %v188_v61 = vadd.f32 0.5, %v518_v25  ;;  %v574_v23 = vtrunc.f32 %v173_v9  ;;  %v158_v25 = vadd.f32 0.5, %v726_v19 }
  0xd4   :  { %v182_v26 = vpop.f32.mrf.mxu0 }
  0xd5   :  { %v183_v1 = vadd.f32 0.5, %v182_v26  ;;  %v580_v6 = vtrunc.f32 %v188_v61  ;;  %v572_v26 = vtrunc.f32 %v168_v13 }
  0xd6   :  { %v521_v27 = vpop.f32.mrf.mxu0 }
  0xd7   :  { %v198_v50 = vadd.f32 0.5, %v521_v27  ;;  %v578_v10 = vtrunc.f32 %v183_v1  ;;  %v581_v15 = vcvt.f32.s32 %v580_v6  ;;  %v577_v27 = vcvt.f32.s32 %v576_v14 }
  0xd8   :  { %v192_v28 = vpop.f32.mrf.mxu0  ;;  %v573_v19 = vcvt.f32.s32 %v572_v26 }
  0xd9   :  { %v193_v57 = vadd.f32 0.5, %v192_v28  ;;  %v584_v62 = vtrunc.f32 %v198_v50  ;;  %v579_v24 = vcvt.f32.s32 %v578_v10  ;;  %vm271_vm10 = vcmp.eq.s32.totalorder %v255_v12, %v581_v15 }
  0xda   :  { %v524_v29 = vpop.f32.mrf.mxu0  ;;  %v153_v28 = vadd.f32 0.5, %v728_v20  ;;  %vm269_vm12 = vcmp.eq.s32.totalorder %v253_v21, %v577_v27  ;;  %v250_v20 = vadd.s32 16, %v734_v36  ;;  %vm267_vm14 = vcmp.eq.s32.totalorder %v251_v32, %v573_v19 }
  0xdb   :  { %v208_v41 = vadd.f32 0.5, %v524_v29  ;;  %v582_v2 = vtrunc.f32 %v193_v57  ;;  %v585_v7 = vcvt.f32.s32 %v584_v62  ;;  %v570_v29 = vtrunc.f32 %v163_v17 }
  0xdc   :  { %v202_v30 = vpop.f32.mrf.mxu0  ;;  %vm270_vm11 = vcmp.eq.s32.totalorder %v254_v16, %v579_v24 }
  0xdd   :  { %v203_v46 = vadd.f32 0.5, %v202_v30  ;;  %v588_v52 = vtrunc.f32 %v208_v41  ;;  %v583_v11 = vcvt.f32.s32 %v582_v2  ;;  %vm273_vm8 = vcmp.eq.s32.totalorder %v257_v4, %v585_v7 }
  0xde   :  { %v527_v31 = vpop.f32.mrf.mxu0  ;;  %v575_v30 = vcvt.f32.s32 %v574_v23 }
  0xdf   :  { %v218_v34 = vadd.f32 0.5, %v527_v31  ;;  %v586_v58 = vtrunc.f32 %v203_v46  ;;  %v589_v63 = vcvt.f32.s32 %v588_v52  ;;  %vm272_vm9 = vcmp.eq.s32.totalorder %v256_v8, %v583_v11 }
  0xe0   :  { %v212_v33 = vpop.f32.mrf.mxu0  ;;  %v568_v31 = vtrunc.f32 %v158_v25  ;;  %vm268_vm13 = vcmp.eq.s32.totalorder %v252_v22, %v575_v30 }
  0xe1   :  { %v213_v37 = vadd.f32 0.5, %v212_v33  ;;  %v592_v42 = vtrunc.f32 %v218_v34  ;;  %v587_v3 = vcvt.f32.s32 %v586_v58  ;;  %vm275_vm6 = vcmp.eq.s32.totalorder %v259_v60, %v589_v63 }
  0xe2   :  { %v530_v35 = vpop.f32.mrf.mxu0  ;;  %v566_v33 = vtrunc.f32 %v153_v28  ;;  %v571_v34 = vcvt.f32.s32 %v570_v29 }
  0xe3   :  { %v228_v38 = vadd.f32 0.5, %v530_v35  ;;  %v590_v47 = vtrunc.f32 %v213_v37  ;;  %v593_v53 = vcvt.f32.s32 %v592_v42  ;;  %vm274_vm7 = vcmp.eq.s32.totalorder %v258_v0, %v587_v3 }
  0xe4   :  { %v222_v39 = vpop.f32.mrf.mxu0  ;;  %v569_v35 = vcvt.f32.s32 %v568_v31  ;;  %v249_v37 = vadd.s32 8, %v734_v36  ;;  %vm266_vm15 = vcmp.eq.s32.totalorder %v250_v20, %v571_v34 }
  0xe5   :  { %v596_v43 = vtrunc.f32 %v228_v38  ;;  %v223_v44 = vadd.f32 0.5, %v222_v39  ;;  %v591_v59 = vcvt.f32.s32 %v590_v47  ;;  %vm277_vm4 = vcmp.eq.s32.totalorder %v261_v51, %v593_v53  ;;  %v312_v39 = vld [vmem:[%s799_s3] sm:$0xff] }
  0xe6   :  { %v567_v38 = vcvt.f32.s32 %v566_v33  ;;  %vm265_vm0 = vcmp.eq.s32.totalorder %v249_v37, %v569_v35 }
  0xe7   :  { %v597_v48 = vcvt.f32.s32 %v596_v43  ;;  %v594_v49 = vtrunc.f32 %v223_v44  ;;  %vm276_vm5 = vcmp.eq.s32.totalorder %v260_v56, %v591_v59 }
  0xe8   :  { %vm264_vm1 = vcmp.eq.s32.totalorder %v734_v36, %v567_v38 }
  0xe9   :  { %v595_v54 = vcvt.f32.s32 %v594_v49  ;;  %vm279_vm2 = vcmp.eq.s32.totalorder %v263_v40, %v597_v48 }
  0xea   :  { %532 = vmatpush3.msk.msra.mxu1 %vm279_vm2, %v630_v55  ;;  %vm384_vm2 = vcmask 1043456  }
  0xeb   :  { %vm278_vm3 = vcmp.eq.s32.totalorder %v262_v45, %v595_v54  ;;  %533 = vmatprep.subr.mxu1 %v628_v18 }
  0xec   :  { %534 = vmatpush3.msk.msra.mxu1 %vm278_vm3, %v630_v55 }
  0xed   :  { %535 = vmatprep.subr.mxu1 %v628_v18 }
  0xee   :  { %536 = vmatpush3.msk.msra.mxu1 %vm277_vm4, %v630_v55 }
  0xef   :  { %537 = vmatprep.subr.mxu1 %v628_v18 }
  0xf0   :  { %538 = vmatpush3.msk.msra.mxu1 %vm276_vm5, %v630_v55 }
  0xf1   :  { %539 = vmatprep.subr.mxu1 %v628_v18 }
  0xf2   :  { %540 = vmatpush3.msk.msra.mxu1 %vm275_vm6, %v630_v55 }
  0xf3   :  { %541 = vmatprep.subr.mxu1 %v628_v18 }
  0xf4   :  { %542 = vmatpush3.msk.msra.mxu1 %vm274_vm7, %v630_v55 }
  0xf5   :  { %543 = vmatprep.subr.mxu1 %v628_v18 }
  0xf6   :  { %544 = vmatpush3.msk.msra.mxu1 %vm273_vm8, %v630_v55 }
  0xf7   :  { %545 = vmatprep.subr.mxu1 %v628_v18 }
  0xf8   :  { %546 = vmatpush3.msk.msra.mxu1 %vm272_vm9, %v630_v55 }
  0xf9   :  { %547 = vmatprep.subr.mxu1 %v628_v18 }
  0xfa   :  { %548 = vmatpush3.msk.msra.mxu1 %vm271_vm10, %v630_v55 }
  0xfb   :  { %549 = vmatprep.subr.mxu1 %v628_v18 }
  0xfc   :  { %550 = vmatpush3.msk.msra.mxu1 %vm270_vm11, %v630_v55 }
  0xfd   :  { %551 = vmatprep.subr.mxu1 %v628_v18 }
  0xfe   :  { %552 = vmatpush3.msk.msra.mxu1 %vm269_vm12, %v630_v55 }
  0xff   :  { %553 = vmatprep.subr.mxu1 %v628_v18 }
 0x100   :  { %554 = vmatpush3.msk.msra.mxu1 %vm268_vm13, %v630_v55 }
 0x101   :  { %555 = vmatprep.subr.mxu1 %v628_v18 }
 0x102   :  { %556 = vmatpush3.msk.msra.mxu1 %vm267_vm14, %v630_v55 }
 0x103   :  { %557 = vmatprep.subr.mxu1 %v628_v18 }
 0x104   :  { %558 = vmatpush3.msk.msra.mxu1 %vm266_vm15, %v630_v55 }
 0x105   :  { %559 = vmatprep.subr.mxu1 %v628_v18 }
 0x106   :  { %560 = vmatpush3.msk.msra.mxu1 %vm265_vm0, %v630_v55 }
 0x107   :  { %561 = vmatprep.subr.mxu1 %v628_v18  ;;  %v393_v18 = vstv %s796_s0 }
 0x108   :  { %562 = vmatpush3.msk.msra.mxu1 %vm264_vm1, %v630_v55 }
 0x109   :  { %564 = vmatmul.mubr.f32.vlgmr.msra.gmra.mxu1 %v312_v39 }
 0x1c9   :  { %v379_v40 = vpop.f32.mrf.mxu1 }
 0x1ca   :  { %v383_v41 = vmul.f32 %v379_v40, %v379_v40  ;;  %v394_v51 = vadd.f32 %v393_v18, %v379_v40 }
 0x1cb   :  { %v565_v42 = vpop.f32.mrf.mxu1 }
 0x1cc   :  { %v385_v43 = vsel %vm384_vm2, %v383_v41, 0.0 }
 0x1cd   :  { %v386_v44 = vrot.slane %v385_v43, 4 }
 0x1cf   :  { %v387_v45 = vadd.f32 %v386_v44, %v385_v43 }
 0x1d1   :  { %v388_v46 = vrot.slane %v387_v45, 2 }
 0x1d3   :  { %v389_v47 = vadd.f32 %v388_v46, %v387_v45 }
 0x1d5   :  { %v390_v48 = vrot.slane %v389_v47, 1 }
 0x1d7   :  { %v391_v49 = vadd.f32 %v390_v48, %v389_v47 }
 0x1d9   :  { %v395_v50 = vsub.f32 %v391_v49, %v379_v40 }
 0x1db   :  { %v396_v36 = vmul.f32 0.5, %v395_v50 }
 0x1dd   :  { %v398_v52 = vrot.slane %v396_v36, 7 }
 0x1df   :  { %v400_v53 = vadd.f32 %v398_v52, %v394_v51 }
 0x1e1   :  { %v470_v54 = vmul.f32 -1.442695, %v400_v53 }
 0x1e3   :  { %602 = vpow2.f32 %v470_v54 }
 0x1f0   :  { %v603_v55 = vpop.eup %602 }
 0x1f1   :  { %v404_v56 = vadd.f32 1.0, %v603_v55 }
 0x1f3   :  { %604 = vrcp.f32 %v404_v56 }
 0x200   :  { %v605_v57 = vpop.eup %604 }
 0x201   :  { %407 = vst [vmem:[#allocation3 - $0x5] sm:$0x20] %v605_v57 }
 0x202   :  { %617 = shalt.err (!%p614_p4)
}
 0x203   :  { %417 = dma.vmem_to_hbm [thread:$0]  %s415_s24, 16, %s800_s4, [#allocation4]  }
 0x204   :  { %626 = dma.done.wait [#allocation4], 16  }
 0x205   :  { %627 = vsyncadd [#allocation4], 4294967280 }
 0x206   :  { %421 = vsyncpa [#allocation4], 1 }

</bundles_post_ra>
